<compile_context>
chip_gen: v6e
topology: v6e:2x2x1
jax: 0.10.0
libtpu: 0.0.40
codegen_flags: <defaults>
</compile_context>

<pallas_src>
import math
from functools import partial

import jax
import jax.numpy as jnp
from jax.experimental import pallas as pl
from jax.experimental.pallas import tpu as pltpu


def _sigmoid(x):
    # sigmoid(x) = 0.5 * tanh(0.5 x) + 0.5 : one EUP op on the serial critical path.
    return 0.5 * jnp.tanh(0.5 * x) + 0.5


def lstm_recurrence_kernel(gx_ref, wh_ref, hn_ref, h_scratch, c_scratch, *, unroll):
    """One time-chunk of the serial LSTM recurrence.

    gx_ref : (T, Bp, 4H) bf16  precomputed x_t @ W_x + b, gate order [i, f, g, o]
    wh_ref : (H, 4H)     bf16  hidden->gates weights [V_i | V_f | V_c | V_o]
    hn_ref : (Bp, H)     f32   final hidden state (written on the last chunk)
    h_scratch, c_scratch : (Bp, H) f32 VMEM carry across grid steps
    """
    T = gx_ref.shape[0]
    H = wh_ref.shape[0]

    @pl.when(pl.program_id(0) == 0)
    def _init():
        h_scratch[...] = jnp.zeros_like(h_scratch)
        c_scratch[...] = jnp.zeros_like(c_scratch)

    wh = wh_ref[...]                                    # bf16 recurrent weights in vregs

    def step(t, carry):
        h, c = carry                                    # f32 state
        # Only this matmul sits on the serial h->h critical path: bf16 operands give a
        # guaranteed single MXU pass; f32 accumulation preserves state precision.
        gates = gx_ref[t].astype(jnp.float32) + jnp.dot(
            h.astype(jnp.bfloat16), wh, preferred_element_type=jnp.float32)  # (Bp, 4H)

        if 4 * H <= 128:
            # 4H fits one vreg lane row: two full-width EUP passes, then cheap slices.
            sg = _sigmoid(gates)
            th = jnp.tanh(gates)
            i_t = sg[:, 0 * H:1 * H]
            f_t = sg[:, 1 * H:2 * H]
            g_t = th[:, 2 * H:3 * H]
            o_t = sg[:, 3 * H:4 * H]
        else:
            # Real hidden sizes: slice first so no EUP work is discarded
            # (slices are lane-aligned multiples of 128 once H >= 128).
            i_t = _sigmoid(gates[:, 0 * H:1 * H])
            f_t = _sigmoid(gates[:, 1 * H:2 * H])
            g_t = jnp.tanh(gates[:, 2 * H:3 * H])
            o_t = _sigmoid(gates[:, 3 * H:4 * H])

        c_new = f_t * c + i_t * g_t
        h_new = o_t * jnp.tanh(c_new)
        return (h_new, c_new)

    h0 = h_scratch[...]
    c0 = c_scratch[...]
    h_n, c_n = jax.lax.fori_loop(0, T, step, (h0, c0), unroll=unroll)
    h_scratch[...] = h_n
    c_scratch[...] = c_n

    @pl.when(pl.program_id(0) == pl.num_programs(0) - 1)
    def _finalize():
        hn_ref[...] = h_n


def _round_up(x, m):
    return ((x + m - 1) // m) * m


def _pick_time_chunk(S, Bp, H, budget_bytes=24 * 1024 * 1024):
    """Largest divisor of S whose double-buffered bf16 gx chunk fits the VMEM budget."""
    best = 1
    for t in range(1, S + 1):
        if S % t == 0 and 2 * t * Bp * 4 * H * 2 <= budget_bytes:
            best = t
    return best


@jax.jit
def my_lstm_forward(text, embedding_matrix, params):
    """Full MyLSTM forward: embed -> (hoisted input proj) -> LSTM recurrence -> dense."""
    wx, wh, b, wd, bd = params          # (E,4H), (H,4H), (1,4H), (H,P), (1,P)
    B, S = text.shape
    E = embedding_matrix.shape[1]
    H = wh.shape[0]
    if S < 1:
        raise ValueError("sequence length must be >= 1")

    # Embedding lookup (plain JAX gather glue).
    x = jnp.take(embedding_matrix, text, axis=0)                    # (B, S, E)
    x_tm = jnp.transpose(x, (1, 0, 2))                              # time-major (S, B, E)

    # Hoisted input projection: one big, well-shaped MXU matmul, off the serial path.
    gx = (x_tm.reshape(S * B, E) @ wx + b).reshape(S, B, 4 * H)     # (S, B, 4H)

    # Pad batch to a bf16 sublane multiple so every per-step tile is unmasked;
    # padded rows run an independent (discarded) LSTM on zero input.
    Bp = max(16, _round_up(B, 16))
    gx = jnp.pad(gx, ((0, 0), (0, Bp - B), (0, 0)))
    # Stream gx in bf16: halves HBM traffic on the largest tensor; upcast in-kernel.
    gx = gx.astype(jnp.bfloat16)
    wh_bf16 = wh.astype(jnp.bfloat16)

    # Time chunking: double-buffered DMA of the next chunk overlaps the recurrence
    # on the current chunk; chunk chosen to fit the (v7x-safe) VMEM budget.
    T = _pick_time_chunk(S, Bp, H)
    unroll = T if T <= 8 else 8          # full unroll only for short chunks

    h_n = pl.pallas_call(
        partial(lstm_recurrence_kernel, unroll=unroll),
        out_shape=jax.ShapeDtypeStruct((Bp, H), jnp.float32),
        grid_spec=pltpu.PrefetchScalarGridSpec(
            num_scalar_prefetch=0,
            grid=(S // T,),
            in_specs=[
                pl.BlockSpec((T, Bp, 4 * H), lambda t: (t, 0, 0)),   # gx time chunk
                pl.BlockSpec((H, 4 * H), lambda t: (0, 0)),          # W_h (resident)
            ],
            out_specs=pl.BlockSpec((Bp, H), lambda t: (0, 0)),       # h_n (resident)
            scratch_shapes=[
                pltpu.VMEM((Bp, H), jnp.float32),                    # h carry
                pltpu.VMEM((Bp, H), jnp.float32),                    # c carry
            ],
        ),
        compiler_params=pltpu.CompilerParams(
            dimension_semantics=("arbitrary",),       # serial recurrence over time
            vmem_limit_bytes=32 * 1024 * 1024,
        ),
    )(gx, wh_bf16)

    h_n = h_n[:B]                                                    # drop batch padding

    # Dense head (hidden_dim -> polarities_dim): tiny, plain JAX.
    return h_n @ wd + bd


def reference_forward(text, embedding_matrix, params):
    """Pure-JAX f32 reference matching the PyTorch module semantics."""
    wx, wh, b, wd, bd = params
    H = wh.shape[0]
    x = jnp.take(embedding_matrix, text, axis=0)     # (B, S, E)
    B = x.shape[0]

    def step(carry, x_t):
        h, c = carry
        gates = x_t @ wx + h @ wh + b[0]
        i_t = jax.nn.sigmoid(gates[:, 0 * H:1 * H])
        f_t = jax.nn.sigmoid(gates[:, 1 * H:2 * H])
        g_t = jnp.tanh(gates[:, 2 * H:3 * H])
        o_t = jax.nn.sigmoid(gates[:, 3 * H:4 * H])
        c = f_t * c + i_t * g_t
        h = o_t * jnp.tanh(c)
        return (h, c), h

    h0 = jnp.zeros((B, H), jnp.float32)
    c0 = jnp.zeros((B, H), jnp.float32)
    (h_n, _), _ = jax.lax.scan(step, (h0, c0), jnp.transpose(x, (1, 0, 2)))
    return h_n @ wd + bd[0]


if __name__ == "__main__":
    # Small shapes consistent with the module.
    VOCAB, EMBED_DIM, HIDDEN_DIM, POLARITIES = 50, 16, 32, 3
    BATCH, SEQ = 2, 8

    key = jax.random.PRNGKey(0)
    keys = jax.random.split(key, 8)

    # Deterministic "pretrained" embedding matrix.
    embedding_matrix = jax.random.normal(keys[0], (VOCAB, EMBED_DIM), jnp.float32)

    # LSTM params, uniform(-1/sqrt(H), 1/sqrt(H)) like init_weights().
    stdv = 1.0 / math.sqrt(HIDDEN_DIM)
    wx = jax.random.uniform(keys[1], (EMBED_DIM, 4 * HIDDEN_DIM), jnp.float32,
                            -stdv, stdv)            # [U_i | U_f | U_c | U_o]
    wh = jax.random.uniform(keys[2], (HIDDEN_DIM, 4 * HIDDEN_DIM), jnp.float32,
                            -stdv, stdv)            # [V_i | V_f | V_c | V_o]
    b = jax.random.uniform(keys[3], (1, 4 * HIDDEN_DIM), jnp.float32,
                           -stdv, stdv)             # [b_i | b_f | b_c | b_o]

    # Dense head (nn.Linear(hidden_dim, polarities_dim)); W passed pre-transposed.
    wd = jax.random.uniform(keys[4], (HIDDEN_DIM, POLARITIES), jnp.float32,
                            -stdv, stdv)
    bd = jax.random.uniform(keys[5], (1, POLARITIES), jnp.float32, -stdv, stdv)

    params = (wx, wh, b, wd, bd)

    # Token ids: inputs[0] in the PyTorch module.
    text = jax.random.randint(keys[6], (BATCH, SEQ), 0, VOCAB, jnp.int32)

    out = my_lstm_forward(text, embedding_matrix, params)
    out = jax.block_until_ready(out)

    ref = reference_forward(text, embedding_matrix, params)
    assert out.shape == (BATCH, POLARITIES)
    # Kernel uses bf16 gx streaming + bf16 MXU operands (f32 accumulation); compare
    # against the f32 reference with a tolerance that covers bf16 rounding.
    assert jnp.allclose(out, ref, atol=2e-2, rtol=2e-2), (out, ref)

    print("KERNEL_OK")
</pallas_src>

<mosaic_0001>
module attributes {stable_mosaic.version = 11 : i64} {
  func.func @lstm_recurrence_kernel(%arg0: i32, %arg1: memref<8x16x128xbf16, #tpu.memory_space<vmem>>, %arg2: memref<32x128xbf16, #tpu.memory_space<vmem>>, %arg3: memref<16x32xf32, #tpu.memory_space<vmem>>, %arg4: memref<16x32xf32, #tpu.memory_space<vmem>>, %arg5: memref<16x32xf32, #tpu.memory_space<vmem>>) attributes {dimension_semantics = [#tpu.dimension_semantics<arbitrary>], iteration_bounds = array<i64: 1>, scalar_prefetch = 0 : i64, scratch_operands = 2 : i64, tpu.core_type = #tpu.core_type<tc>, window_params = [{transform_indices = @transform_0, window_bounds = array<i64: 8, 16, 128>}, {pipeline_mode = #tpu.pipeline_mode<synchronous>, transform_indices = @transform_1, window_bounds = array<i64: 32, 128>}, {pipeline_mode = #tpu.pipeline_mode<synchronous>, transform_indices = @transform_2, window_bounds = array<i64: 16, 32>}]} {
    %c0_i32 = arith.constant 0 : i32
    %0 = arith.cmpi eq, %arg0, %c0_i32 : i32
    %1 = arith.extui %0 : i1 to i32
    %c0_i32_0 = arith.constant 0 : i32
    %2 = arith.cmpi ne, %1, %c0_i32_0 : i32
    scf.if %2 {
      %cst_60 = arith.constant 0.000000e+00 : f32
      %203 = vector.broadcast %cst_60 : f32 to vector<16x32xf32>
      %c0_61 = arith.constant 0 : index
      %c0_62 = arith.constant 0 : index
      %204 = vector.load %arg4[%c0_61, %c0_62] : memref<16x32xf32, #tpu.memory_space<vmem>>, vector<16x32xf32>
      tpu.vector_store %arg4[%c0_61, %c0_62], %203 {strides = array<i32>} : memref<16x32xf32, #tpu.memory_space<vmem>>, vector<16x32xf32>,
      %cst_63 = arith.constant 0.000000e+00 : f32
      %205 = vector.broadcast %cst_63 : f32 to vector<16x32xf32>
      %c0_64 = arith.constant 0 : index
      %c0_65 = arith.constant 0 : index
      %206 = vector.load %arg5[%c0_64, %c0_65] : memref<16x32xf32, #tpu.memory_space<vmem>>, vector<16x32xf32>
      tpu.vector_store %arg5[%c0_64, %c0_65], %205 {strides = array<i32>} : memref<16x32xf32, #tpu.memory_space<vmem>>, vector<16x32xf32>,
    } else {
    }
    %c0 = arith.constant 0 : index
    %c0_1 = arith.constant 0 : index
    %3 = vector.load %arg2[%c0, %c0_1] : memref<32x128xbf16, #tpu.memory_space<vmem>>, vector<32x128xbf16>
    %c0_2 = arith.constant 0 : index
    %c0_3 = arith.constant 0 : index
    %4 = vector.load %arg4[%c0_2, %c0_3] : memref<16x32xf32, #tpu.memory_space<vmem>>, vector<16x32xf32>
    %c0_4 = arith.constant 0 : index
    %c0_5 = arith.constant 0 : index
    %5 = vector.load %arg5[%c0_4, %c0_5] : memref<16x32xf32, #tpu.memory_space<vmem>>, vector<16x32xf32>
    %c0_i32_6 = arith.constant 0 : i32
    %6 = arith.index_cast %c0_i32_6 : i32 to index
    %c0_7 = arith.constant 0 : index
    %c0_8 = arith.constant 0 : index
    %7 = vector.load %arg1[%6, %c0_7, %c0_8] : memref<8x16x128xbf16, #tpu.memory_space<vmem>>, vector<1x16x128xbf16>
    %8 = vector.shape_cast %7 : vector<1x16x128xbf16> to vector<16x128xbf16>
    %9 = arith.extf %8 : vector<16x128xbf16> to vector<16x128xf32>
    %10 = arith.truncf %4 : vector<16x32xf32> to vector<16x32xbf16>
    %cst = arith.constant dense<0.000000e+00> : vector<16x128xf32>
    %11 = tpu.matmul %10, %3, %cst {dimension_numbers = #tpu.dot_dimension_numbers<[1], [0], [0], [1], [0, 0, 1, 1], [], []>} : vector<16x32xbf16>, vector<32x128xbf16>, vector<16x128xf32> -> vector<16x128xf32>
    %12 = arith.addf %9, %11 : vector<16x128xf32>
    %cst_9 = arith.constant 5.000000e-01 : f32
    %13 = vector.broadcast %cst_9 : f32 to vector<16x128xf32>
    %14 = arith.mulf %13, %12 : vector<16x128xf32>
    %15 = math.tanh %14 : vector<16x128xf32>
    %cst_10 = arith.constant 5.000000e-01 : f32
    %16 = vector.broadcast %cst_10 : f32 to vector<16x128xf32>
    %17 = arith.mulf %16, %15 : vector<16x128xf32>
    %cst_11 = arith.constant 5.000000e-01 : f32
    %18 = vector.broadcast %cst_11 : f32 to vector<16x128xf32>
    %19 = arith.addf %17, %18 : vector<16x128xf32>
    %20 = math.tanh %12 : vector<16x128xf32>
    %21 = vector.extract_strided_slice %19 {offsets = [0, 0], sizes = [16, 32], strides = [1, 1]} : vector<16x128xf32> to vector<16x32xf32>
    %22 = vector.extract_strided_slice %19 {offsets = [0, 32], sizes = [16, 32], strides = [1, 1]} : vector<16x128xf32> to vector<16x32xf32>
    %23 = vector.extract_strided_slice %20 {offsets = [0, 64], sizes = [16, 32], strides = [1, 1]} : vector<16x128xf32> to vector<16x32xf32>
    %24 = vector.extract_strided_slice %19 {offsets = [0, 96], sizes = [16, 32], strides = [1, 1]} : vector<16x128xf32> to vector<16x32xf32>
    %25 = arith.mulf %22, %5 : vector<16x32xf32>
    %26 = arith.mulf %21, %23 : vector<16x32xf32>
    %27 = arith.addf %25, %26 : vector<16x32xf32>
    %28 = math.tanh %27 : vector<16x32xf32>
    %29 = arith.mulf %24, %28 : vector<16x32xf32>
    %c1_i32 = arith.constant 1 : i32
    %30 = arith.index_cast %c1_i32 : i32 to index
    %c0_12 = arith.constant 0 : index
    %c0_13 = arith.constant 0 : index
    %31 = vector.load %arg1[%30, %c0_12, %c0_13] : memref<8x16x128xbf16, #tpu.memory_space<vmem>>, vector<1x16x128xbf16>
    %32 = vector.shape_cast %31 : vector<1x16x128xbf16> to vector<16x128xbf16>
    %33 = arith.extf %32 : vector<16x128xbf16> to vector<16x128xf32>
    %34 = arith.truncf %29 : vector<16x32xf32> to vector<16x32xbf16>
    %cst_14 = arith.constant dense<0.000000e+00> : vector<16x128xf32>
    %35 = tpu.matmul %34, %3, %cst_14 {dimension_numbers = #tpu.dot_dimension_numbers<[1], [0], [0], [1], [0, 0, 1, 1], [], []>} : vector<16x32xbf16>, vector<32x128xbf16>, vector<16x128xf32> -> vector<16x128xf32>
    %36 = arith.addf %33, %35 : vector<16x128xf32>
    %cst_15 = arith.constant 5.000000e-01 : f32
    %37 = vector.broadcast %cst_15 : f32 to vector<16x128xf32>
    %38 = arith.mulf %37, %36 : vector<16x128xf32>
    %39 = math.tanh %38 : vector<16x128xf32>
    %cst_16 = arith.constant 5.000000e-01 : f32
    %40 = vector.broadcast %cst_16 : f32 to vector<16x128xf32>
    %41 = arith.mulf %40, %39 : vector<16x128xf32>
    %cst_17 = arith.constant 5.000000e-01 : f32
    %42 = vector.broadcast %cst_17 : f32 to vector<16x128xf32>
    %43 = arith.addf %41, %42 : vector<16x128xf32>
    %44 = math.tanh %36 : vector<16x128xf32>
    %45 = vector.extract_strided_slice %43 {offsets = [0, 0], sizes = [16, 32], strides = [1, 1]} : vector<16x128xf32> to vector<16x32xf32>
    %46 = vector.extract_strided_slice %43 {offsets = [0, 32], sizes = [16, 32], strides = [1, 1]} : vector<16x128xf32> to vector<16x32xf32>
    %47 = vector.extract_strided_slice %44 {offsets = [0, 64], sizes = [16, 32], strides = [1, 1]} : vector<16x128xf32> to vector<16x32xf32>
    %48 = vector.extract_strided_slice %43 {offsets = [0, 96], sizes = [16, 32], strides = [1, 1]} : vector<16x128xf32> to vector<16x32xf32>
    %49 = arith.mulf %46, %27 : vector<16x32xf32>
    %50 = arith.mulf %45, %47 : vector<16x32xf32>
    %51 = arith.addf %49, %50 : vector<16x32xf32>
    %52 = math.tanh %51 : vector<16x32xf32>
    %53 = arith.mulf %48, %52 : vector<16x32xf32>
    %c2_i32 = arith.constant 2 : i32
    %54 = arith.index_cast %c2_i32 : i32 to index
    %c0_18 = arith.constant 0 : index
    %c0_19 = arith.constant 0 : index
    %55 = vector.load %arg1[%54, %c0_18, %c0_19] : memref<8x16x128xbf16, #tpu.memory_space<vmem>>, vector<1x16x128xbf16>
    %56 = vector.shape_cast %55 : vector<1x16x128xbf16> to vector<16x128xbf16>
    %57 = arith.extf %56 : vector<16x128xbf16> to vector<16x128xf32>
    %58 = arith.truncf %53 : vector<16x32xf32> to vector<16x32xbf16>
    %cst_20 = arith.constant dense<0.000000e+00> : vector<16x128xf32>
    %59 = tpu.matmul %58, %3, %cst_20 {dimension_numbers = #tpu.dot_dimension_numbers<[1], [0], [0], [1], [0, 0, 1, 1], [], []>} : vector<16x32xbf16>, vector<32x128xbf16>, vector<16x128xf32> -> vector<16x128xf32>
    %60 = arith.addf %57, %59 : vector<16x128xf32>
    %cst_21 = arith.constant 5.000000e-01 : f32
    %61 = vector.broadcast %cst_21 : f32 to vector<16x128xf32>
    %62 = arith.mulf %61, %60 : vector<16x128xf32>
    %63 = math.tanh %62 : vector<16x128xf32>
    %cst_22 = arith.constant 5.000000e-01 : f32
    %64 = vector.broadcast %cst_22 : f32 to vector<16x128xf32>
    %65 = arith.mulf %64, %63 : vector<16x128xf32>
    %cst_23 = arith.constant 5.000000e-01 : f32
    %66 = vector.broadcast %cst_23 : f32 to vector<16x128xf32>
    %67 = arith.addf %65, %66 : vector<16x128xf32>
    %68 = math.tanh %60 : vector<16x128xf32>
    %69 = vector.extract_strided_slice %67 {offsets = [0, 0], sizes = [16, 32], strides = [1, 1]} : vector<16x128xf32> to vector<16x32xf32>
    %70 = vector.extract_strided_slice %67 {offsets = [0, 32], sizes = [16, 32], strides = [1, 1]} : vector<16x128xf32> to vector<16x32xf32>
    %71 = vector.extract_strided_slice %68 {offsets = [0, 64], sizes = [16, 32], strides = [1, 1]} : vector<16x128xf32> to vector<16x32xf32>
    %72 = vector.extract_strided_slice %67 {offsets = [0, 96], sizes = [16, 32], strides = [1, 1]} : vector<16x128xf32> to vector<16x32xf32>
    %73 = arith.mulf %70, %51 : vector<16x32xf32>
    %74 = arith.mulf %69, %71 : vector<16x32xf32>
    %75 = arith.addf %73, %74 : vector<16x32xf32>
    %76 = math.tanh %75 : vector<16x32xf32>
    %77 = arith.mulf %72, %76 : vector<16x32xf32>
    %c3_i32 = arith.constant 3 : i32
    %78 = arith.index_cast %c3_i32 : i32 to index
    %c0_24 = arith.constant 0 : index
    %c0_25 = arith.constant 0 : index
    %79 = vector.load %arg1[%78, %c0_24, %c0_25] : memref<8x16x128xbf16, #tpu.memory_space<vmem>>, vector<1x16x128xbf16>
    %80 = vector.shape_cast %79 : vector<1x16x128xbf16> to vector<16x128xbf16>
    %81 = arith.extf %80 : vector<16x128xbf16> to vector<16x128xf32>
    %82 = arith.truncf %77 : vector<16x32xf32> to vector<16x32xbf16>
    %cst_26 = arith.constant dense<0.000000e+00> : vector<16x128xf32>
    %83 = tpu.matmul %82, %3, %cst_26 {dimension_numbers = #tpu.dot_dimension_numbers<[1], [0], [0], [1], [0, 0, 1, 1], [], []>} : vector<16x32xbf16>, vector<32x128xbf16>, vector<16x128xf32> -> vector<16x128xf32>
    %84 = arith.addf %81, %83 : vector<16x128xf32>
    %cst_27 = arith.constant 5.000000e-01 : f32
    %85 = vector.broadcast %cst_27 : f32 to vector<16x128xf32>
    %86 = arith.mulf %85, %84 : vector<16x128xf32>
    %87 = math.tanh %86 : vector<16x128xf32>
    %cst_28 = arith.constant 5.000000e-01 : f32
    %88 = vector.broadcast %cst_28 : f32 to vector<16x128xf32>
    %89 = arith.mulf %88, %87 : vector<16x128xf32>
    %cst_29 = arith.constant 5.000000e-01 : f32
    %90 = vector.broadcast %cst_29 : f32 to vector<16x128xf32>
    %91 = arith.addf %89, %90 : vector<16x128xf32>
    %92 = math.tanh %84 : vector<16x128xf32>
    %93 = vector.extract_strided_slice %91 {offsets = [0, 0], sizes = [16, 32], strides = [1, 1]} : vector<16x128xf32> to vector<16x32xf32>
    %94 = vector.extract_strided_slice %91 {offsets = [0, 32], sizes = [16, 32], strides = [1, 1]} : vector<16x128xf32> to vector<16x32xf32>
    %95 = vector.extract_strided_slice %92 {offsets = [0, 64], sizes = [16, 32], strides = [1, 1]} : vector<16x128xf32> to vector<16x32xf32>
    %96 = vector.extract_strided_slice %91 {offsets = [0, 96], sizes = [16, 32], strides = [1, 1]} : vector<16x128xf32> to vector<16x32xf32>
    %97 = arith.mulf %94, %75 : vector<16x32xf32>
    %98 = arith.mulf %93, %95 : vector<16x32xf32>
    %99 = arith.addf %97, %98 : vector<16x32xf32>
    %100 = math.tanh %99 : vector<16x32xf32>
    %101 = arith.mulf %96, %100 : vector<16x32xf32>
    %c4_i32 = arith.constant 4 : i32
    %102 = arith.index_cast %c4_i32 : i32 to index
    %c0_30 = arith.constant 0 : index
    %c0_31 = arith.constant 0 : index
    %103 = vector.load %arg1[%102, %c0_30, %c0_31] : memref<8x16x128xbf16, #tpu.memory_space<vmem>>, vector<1x16x128xbf16>
    %104 = vector.shape_cast %103 : vector<1x16x128xbf16> to vector<16x128xbf16>
    %105 = arith.extf %104 : vector<16x128xbf16> to vector<16x128xf32>
    %106 = arith.truncf %101 : vector<16x32xf32> to vector<16x32xbf16>
    %cst_32 = arith.constant dense<0.000000e+00> : vector<16x128xf32>
    %107 = tpu.matmul %106, %3, %cst_32 {dimension_numbers = #tpu.dot_dimension_numbers<[1], [0], [0], [1], [0, 0, 1, 1], [], []>} : vector<16x32xbf16>, vector<32x128xbf16>, vector<16x128xf32> -> vector<16x128xf32>
    %108 = arith.addf %105, %107 : vector<16x128xf32>
    %cst_33 = arith.constant 5.000000e-01 : f32
    %109 = vector.broadcast %cst_33 : f32 to vector<16x128xf32>
    %110 = arith.mulf %109, %108 : vector<16x128xf32>
    %111 = math.tanh %110 : vector<16x128xf32>
    %cst_34 = arith.constant 5.000000e-01 : f32
    %112 = vector.broadcast %cst_34 : f32 to vector<16x128xf32>
    %113 = arith.mulf %112, %111 : vector<16x128xf32>
    %cst_35 = arith.constant 5.000000e-01 : f32
    %114 = vector.broadcast %cst_35 : f32 to vector<16x128xf32>
    %115 = arith.addf %113, %114 : vector<16x128xf32>
    %116 = math.tanh %108 : vector<16x128xf32>
    %117 = vector.extract_strided_slice %115 {offsets = [0, 0], sizes = [16, 32], strides = [1, 1]} : vector<16x128xf32> to vector<16x32xf32>
    %118 = vector.extract_strided_slice %115 {offsets = [0, 32], sizes = [16, 32], strides = [1, 1]} : vector<16x128xf32> to vector<16x32xf32>
    %119 = vector.extract_strided_slice %116 {offsets = [0, 64], sizes = [16, 32], strides = [1, 1]} : vector<16x128xf32> to vector<16x32xf32>
    %120 = vector.extract_strided_slice %115 {offsets = [0, 96], sizes = [16, 32], strides = [1, 1]} : vector<16x128xf32> to vector<16x32xf32>
    %121 = arith.mulf %118, %99 : vector<16x32xf32>
    %122 = arith.mulf %117, %119 : vector<16x32xf32>
    %123 = arith.addf %121, %122 : vector<16x32xf32>
    %124 = math.tanh %123 : vector<16x32xf32>
    %125 = arith.mulf %120, %124 : vector<16x32xf32>
    %c5_i32 = arith.constant 5 : i32
    %126 = arith.index_cast %c5_i32 : i32 to index
    %c0_36 = arith.constant 0 : index
    %c0_37 = arith.constant 0 : index
    %127 = vector.load %arg1[%126, %c0_36, %c0_37] : memref<8x16x128xbf16, #tpu.memory_space<vmem>>, vector<1x16x128xbf16>
    %128 = vector.shape_cast %127 : vector<1x16x128xbf16> to vector<16x128xbf16>
    %129 = arith.extf %128 : vector<16x128xbf16> to vector<16x128xf32>
    %130 = arith.truncf %125 : vector<16x32xf32> to vector<16x32xbf16>
    %cst_38 = arith.constant dense<0.000000e+00> : vector<16x128xf32>
    %131 = tpu.matmul %130, %3, %cst_38 {dimension_numbers = #tpu.dot_dimension_numbers<[1], [0], [0], [1], [0, 0, 1, 1], [], []>} : vector<16x32xbf16>, vector<32x128xbf16>, vector<16x128xf32> -> vector<16x128xf32>
    %132 = arith.addf %129, %131 : vector<16x128xf32>
    %cst_39 = arith.constant 5.000000e-01 : f32
    %133 = vector.broadcast %cst_39 : f32 to vector<16x128xf32>
    %134 = arith.mulf %133, %132 : vector<16x128xf32>
    %135 = math.tanh %134 : vector<16x128xf32>
    %cst_40 = arith.constant 5.000000e-01 : f32
    %136 = vector.broadcast %cst_40 : f32 to vector<16x128xf32>
    %137 = arith.mulf %136, %135 : vector<16x128xf32>
    %cst_41 = arith.constant 5.000000e-01 : f32
    %138 = vector.broadcast %cst_41 : f32 to vector<16x128xf32>
    %139 = arith.addf %137, %138 : vector<16x128xf32>
    %140 = math.tanh %132 : vector<16x128xf32>
    %141 = vector.extract_strided_slice %139 {offsets = [0, 0], sizes = [16, 32], strides = [1, 1]} : vector<16x128xf32> to vector<16x32xf32>
    %142 = vector.extract_strided_slice %139 {offsets = [0, 32], sizes = [16, 32], strides = [1, 1]} : vector<16x128xf32> to vector<16x32xf32>
    %143 = vector.extract_strided_slice %140 {offsets = [0, 64], sizes = [16, 32], strides = [1, 1]} : vector<16x128xf32> to vector<16x32xf32>
    %144 = vector.extract_strided_slice %139 {offsets = [0, 96], sizes = [16, 32], strides = [1, 1]} : vector<16x128xf32> to vector<16x32xf32>
    %145 = arith.mulf %142, %123 : vector<16x32xf32>
    %146 = arith.mulf %141, %143 : vector<16x32xf32>
    %147 = arith.addf %145, %146 : vector<16x32xf32>
    %148 = math.tanh %147 : vector<16x32xf32>
    %149 = arith.mulf %144, %148 : vector<16x32xf32>
    %c6_i32 = arith.constant 6 : i32
    %150 = arith.index_cast %c6_i32 : i32 to index
    %c0_42 = arith.constant 0 : index
    %c0_43 = arith.constant 0 : index
    %151 = vector.load %arg1[%150, %c0_42, %c0_43] : memref<8x16x128xbf16, #tpu.memory_space<vmem>>, vector<1x16x128xbf16>
    %152 = vector.shape_cast %151 : vector<1x16x128xbf16> to vector<16x128xbf16>
    %153 = arith.extf %152 : vector<16x128xbf16> to vector<16x128xf32>
    %154 = arith.truncf %149 : vector<16x32xf32> to vector<16x32xbf16>
    %cst_44 = arith.constant dense<0.000000e+00> : vector<16x128xf32>
    %155 = tpu.matmul %154, %3, %cst_44 {dimension_numbers = #tpu.dot_dimension_numbers<[1], [0], [0], [1], [0, 0, 1, 1], [], []>} : vector<16x32xbf16>, vector<32x128xbf16>, vector<16x128xf32> -> vector<16x128xf32>
    %156 = arith.addf %153, %155 : vector<16x128xf32>
    %cst_45 = arith.constant 5.000000e-01 : f32
    %157 = vector.broadcast %cst_45 : f32 to vector<16x128xf32>
    %158 = arith.mulf %157, %156 : vector<16x128xf32>
    %159 = math.tanh %158 : vector<16x128xf32>
    %cst_46 = arith.constant 5.000000e-01 : f32
    %160 = vector.broadcast %cst_46 : f32 to vector<16x128xf32>
    %161 = arith.mulf %160, %159 : vector<16x128xf32>
    %cst_47 = arith.constant 5.000000e-01 : f32
    %162 = vector.broadcast %cst_47 : f32 to vector<16x128xf32>
    %163 = arith.addf %161, %162 : vector<16x128xf32>
    %164 = math.tanh %156 : vector<16x128xf32>
    %165 = vector.extract_strided_slice %163 {offsets = [0, 0], sizes = [16, 32], strides = [1, 1]} : vector<16x128xf32> to vector<16x32xf32>
    %166 = vector.extract_strided_slice %163 {offsets = [0, 32], sizes = [16, 32], strides = [1, 1]} : vector<16x128xf32> to vector<16x32xf32>
    %167 = vector.extract_strided_slice %164 {offsets = [0, 64], sizes = [16, 32], strides = [1, 1]} : vector<16x128xf32> to vector<16x32xf32>
    %168 = vector.extract_strided_slice %163 {offsets = [0, 96], sizes = [16, 32], strides = [1, 1]} : vector<16x128xf32> to vector<16x32xf32>
    %169 = arith.mulf %166, %147 : vector<16x32xf32>
    %170 = arith.mulf %165, %167 : vector<16x32xf32>
    %171 = arith.addf %169, %170 : vector<16x32xf32>
    %172 = math.tanh %171 : vector<16x32xf32>
    %173 = arith.mulf %168, %172 : vector<16x32xf32>
    %c7_i32 = arith.constant 7 : i32
    %174 = arith.index_cast %c7_i32 : i32 to index
    %c0_48 = arith.constant 0 : index
    %c0_49 = arith.constant 0 : index
    %175 = vector.load %arg1[%174, %c0_48, %c0_49] : memref<8x16x128xbf16, #tpu.memory_space<vmem>>, vector<1x16x128xbf16>
    %176 = vector.shape_cast %175 : vector<1x16x128xbf16> to vector<16x128xbf16>
    %177 = arith.extf %176 : vector<16x128xbf16> to vector<16x128xf32>
    %178 = arith.truncf %173 : vector<16x32xf32> to vector<16x32xbf16>
    %cst_50 = arith.constant dense<0.000000e+00> : vector<16x128xf32>
    %179 = tpu.matmul %178, %3, %cst_50 {dimension_numbers = #tpu.dot_dimension_numbers<[1], [0], [0], [1], [0, 0, 1, 1], [], []>} : vector<16x32xbf16>, vector<32x128xbf16>, vector<16x128xf32> -> vector<16x128xf32>
    %180 = arith.addf %177, %179 : vector<16x128xf32>
    %cst_51 = arith.constant 5.000000e-01 : f32
    %181 = vector.broadcast %cst_51 : f32 to vector<16x128xf32>
    %182 = arith.mulf %181, %180 : vector<16x128xf32>
    %183 = math.tanh %182 : vector<16x128xf32>
    %cst_52 = arith.constant 5.000000e-01 : f32
    %184 = vector.broadcast %cst_52 : f32 to vector<16x128xf32>
    %185 = arith.mulf %184, %183 : vector<16x128xf32>
    %cst_53 = arith.constant 5.000000e-01 : f32
    %186 = vector.broadcast %cst_53 : f32 to vector<16x128xf32>
    %187 = arith.addf %185, %186 : vector<16x128xf32>
    %188 = math.tanh %180 : vector<16x128xf32>
    %189 = vector.extract_strided_slice %187 {offsets = [0, 0], sizes = [16, 32], strides = [1, 1]} : vector<16x128xf32> to vector<16x32xf32>
    %190 = vector.extract_strided_slice %187 {offsets = [0, 32], sizes = [16, 32], strides = [1, 1]} : vector<16x128xf32> to vector<16x32xf32>
    %191 = vector.extract_strided_slice %188 {offsets = [0, 64], sizes = [16, 32], strides = [1, 1]} : vector<16x128xf32> to vector<16x32xf32>
    %192 = vector.extract_strided_slice %187 {offsets = [0, 96], sizes = [16, 32], strides = [1, 1]} : vector<16x128xf32> to vector<16x32xf32>
    %193 = arith.mulf %190, %171 : vector<16x32xf32>
    %194 = arith.mulf %189, %191 : vector<16x32xf32>
    %195 = arith.addf %193, %194 : vector<16x32xf32>
    %196 = math.tanh %195 : vector<16x32xf32>
    %197 = arith.mulf %192, %196 : vector<16x32xf32>
    %c8_i32 = arith.constant 8 : i32
    %c0_54 = arith.constant 0 : index
    %c0_55 = arith.constant 0 : index
    %198 = vector.load %arg4[%c0_54, %c0_55] : memref<16x32xf32, #tpu.memory_space<vmem>>, vector<16x32xf32>
    tpu.vector_store %arg4[%c0_54, %c0_55], %197 {strides = array<i32>} : memref<16x32xf32, #tpu.memory_space<vmem>>, vector<16x32xf32>,
    %c0_56 = arith.constant 0 : index
    %c0_57 = arith.constant 0 : index
    %199 = vector.load %arg5[%c0_56, %c0_57] : memref<16x32xf32, #tpu.memory_space<vmem>>, vector<16x32xf32>
    tpu.vector_store %arg5[%c0_56, %c0_57], %195 {strides = array<i32>} : memref<16x32xf32, #tpu.memory_space<vmem>>, vector<16x32xf32>,
    %c0_i32_58 = arith.constant 0 : i32
    %200 = arith.cmpi eq, %arg0, %c0_i32_58 : i32
    %201 = arith.extui %200 : i1 to i32
    %c0_i32_59 = arith.constant 0 : i32
    %202 = arith.cmpi ne, %201, %c0_i32_59 : i32
    scf.if %202 {
      %c0_60 = arith.constant 0 : index
      %c0_61 = arith.constant 0 : index
      %203 = vector.load %arg3[%c0_60, %c0_61] : memref<16x32xf32, #tpu.memory_space<vmem>>, vector<16x32xf32>
      tpu.vector_store %arg3[%c0_60, %c0_61], %197 {strides = array<i32>} : memref<16x32xf32, #tpu.memory_space<vmem>>, vector<16x32xf32>,
    } else {
    }
    return
  }
  func.func @transform_0(%arg0: i32) -> (i32, i32, i32) {
    %c0_i32 = arith.constant 0 : i32
    %c0_i32_0 = arith.constant 0 : i32
    %c0_i32_1 = arith.constant 0 : i32
    return %arg0, %c0_i32, %c0_i32_0 : i32, i32, i32
  }
  func.func @transform_1(%arg0: i32) -> (i32, i32) {
    %c0_i32 = arith.constant 0 : i32
    %c0_i32_0 = arith.constant 0 : i32
    %c0_i32_1 = arith.constant 0 : i32
    return %c0_i32, %c0_i32_0 : i32, i32
  }
  func.func @transform_2(%arg0: i32) -> (i32, i32) {
    %c0_i32 = arith.constant 0 : i32
    %c0_i32_0 = arith.constant 0 : i32
    %c0_i32_1 = arith.constant 0 : i32
    return %c0_i32, %c0_i32_0 : i32, i32
  }
}

</mosaic_0001>

<bundles_post_ra>
// kernel: my_lstm_forward.1
= control target key start
LH: loop header
LB: loop body
LE: loop exit
PB: predicated region body
PF: predicated region fallthrough
CT: control target
= control target key end

     0   :  { %vm16_vm0 = vcmask 261120   ;;  %v1121_v0 = vmov 0.0   ;;  %vm1122_vm1 = vmmov 0   ;;  %s1124_s15 = smov 64   ;;  %s1310_s1 = inlined_call_operand.vmem [shape: bf16[32,128], index: 1, kind: input, shape index: {}]   ;;  %s1311_s0 = inlined_call_operand.vmem [shape: bf16[8,16,128], index: 0, kind: input, shape index: {}]   ;;  %s1312_s2 = inlined_call_operand.vmem [shape: f32[16,32], index: 2, kind: output, shape index: {}]  }
   0x1   :  { %954 = vmatprep.subr.bf16.mxu0 %v1121_v0  ;;  %v1145_v1 = vld [vmem:[%s1310_s1 + $0x8] sm:$0xff]   ;;  %958 = vmatprep.mubr.msk.bf16.mxu0 %vm1122_vm1, %v1121_v0  ;;  %17 = vst.msk [vmem:[#allocation2] sm:$0xff] %vm16_vm0, %v1121_v0  ;;  %18 = vst.msk [vmem:[#allocation2 + $0x8] sm:$0xff] %vm16_vm0, %v1121_v0  ;;  %v1164_v2 = vld [vmem:[%s1310_s1] sm:$0xff]   ;;  %s1123_s1 = smov 32  }
   0x2   :  { %19 = vst.msk [vmem:[#allocation3] sm:$0xff] %vm16_vm0, %v1121_v0  ;;  %20 = vst.msk [vmem:[#allocation3 + $0x8] sm:$0xff] %vm16_vm0, %v1121_v0  ;;  %962 = vmatprep.subr.bf16.mxu1 %v1121_v0  ;;  %966 = vmatprep.mubr.msk.bf16.mxu1 %vm1122_vm1, %v1121_v0  ;;  %v892_v8 = vld [vmem:[%s1311_s0] sm:$0xff]   ;;  %v923_v47 = vld [vmem:[%s1311_s0 + $0x8] sm:$0xff]  }
   0x3   :  { %955 = vmatpush3.bf16.msra.mxu0 %v1145_v1  ;;  %963 = vmatpush3.bf16.msra.mxu1 %v1145_v1  ;;  %v893_v9 = vunpack.c.l.bf16 %v892_v8  ;;  %v894_v12 = vunpack.c.h.bf16 %v892_v8  ;;  %v897_v48 = vunpack.c.l.bf16 %v923_v47  ;;  %v898_v51 = vunpack.c.h.bf16 %v923_v47 }
   0x4   :  { %956 = vmatprep.subr.bf16.mxu0 %v1121_v0  ;;  %964 = vmatprep.subr.bf16.mxu1 %v1121_v0 }
   0x7   :  { %957 = vmatpush3.bf16.msra.mxu0 %v1164_v2  ;;  %965 = vmatpush3.bf16.msra.mxu1 %v1164_v2 }
   0x8   :  { %v25_v3 = vld [vmem:[#allocation2] sm:$0xff]  ;;  %v26_v4 = vld [vmem:[#allocation2 + $0x8] sm:$0xff]  ;;  %970 = vmatprep.subr.bf16.mxu0 %v1121_v0  ;;  %978 = vmatprep.subr.bf16.mxu1 %v1121_v0 }
   0x9   :  { %v27_v5 = vld [vmem:[#allocation3] sm:$0xff]  ;;  %v33_v6 = vpack.c.bf16 %v26_v4, %v25_v3  ;;  %v28_v7 = vld [vmem:[#allocation3 + $0x8] sm:$0xff] }
   0xa   :  { %105 = vrot.lane.b32.xlu1 %v27_v5, %s1123_s1 }
   0xb   :  { %959 = vmatmul.mubr.msk.bf16.vlgmr.msra.gmra.mxu0 %vm16_vm0, %v33_v6 }
   0xc   :  { %971 = vmatpush3.bf16.msra.mxu0 %v1145_v1  ;;  %974 = vmatprep.mubr.msk.bf16.mxu0 %vm1122_vm1, %v1121_v0 }
   0xd   :  { %972 = vmatprep.subr.bf16.mxu0 %v1121_v0 }
   0xe   :  { %107 = vrot.lane.b32.xlu1 %v28_v7, %s1123_s1 }
  0x10   :  { %973 = vmatpush3.bf16.msra.mxu0 %v1164_v2 }
  0x11   :  { %986 = vmatprep.subr.bf16.mxu0 %v1121_v0 }
  0x7c   :  { %v106_v31 = vpop.permute.xlu1 %105 }
  0x80   :  { %v108_v33 = vpop.permute.xlu1 %107 }
  0xcb   :  { %v84_v10 = vpop.f32.mrf.mxu0 }
  0xcc   :  { %v91_v11 = vadd.f32 %v893_v9, %v84_v10 }
  0xcd   :  { %v960_v13 = vpop.f32.mrf.mxu0 }
  0xce   :  { %1025 = vtanh.f32 %v91_v11  ;;  %v93_v19 = vmul.f32 0.5, %v91_v11 }
  0xcf   :  { %v87_v14 = vpop.f32.mrf.mxu0 }
  0xd0   :  { %v92_v15 = vadd.f32 %v894_v12, %v87_v14 }
  0xd1   :  { %v961_v16 = vpop.f32.mrf.mxu0 }
  0xd2   :  { %1027 = vtanh.f32 %v92_v15  ;;  %v94_v20 = vmul.f32 0.5, %v92_v15 }
  0xd3   :  { %1029 = vtanh.f32 %v93_v19 }
  0xd4   :  { %1031 = vtanh.f32 %v94_v20 }
  0xdb   :  { %v1026_v17 = vpop.eup %1025 }
  0xdc   :  { %115 = vrot.lane.b32.xlu0 %v1026_v17, %s1124_s15 }
  0xdf   :  { %v1028_v18 = vpop.eup %1027 }
  0xe0   :  { %117 = vrot.lane.b32.xlu0 %v1028_v18, %s1124_s15  ;;  %v1030_v21 = vpop.eup %1029 }
  0xe1   :  { %v97_v22 = vmul.f32 0.5, %v1030_v21  ;;  %v1032_v23 = vpop.eup %1031 }
  0xe2   :  { %v98_v25 = vmul.f32 0.5, %v1032_v23  ;;  %v924_v23 = vld [vmem:[%s1311_s0 + $0x10] sm:$0xff]  }
  0xe3   :  { %v99_v24 = vadd.f32 0.5, %v97_v22 }
  0xe4   :  { %v100_v28 = vadd.f32 0.5, %v98_v25 }
  0xe5   :  { %v111_v32 = vmul.f32 %v106_v31, %v99_v24 }
  0xe6   :  { %v112_v36 = vmul.f32 %v108_v33, %v100_v28 }
 0x14e   :  { %v116_v26 = vpop.permute.xlu0 %115 }
 0x14f   :  { %v121_v27 = vmul.f32 %v116_v26, %v99_v24 }
 0x151   :  { %125 = vrot.lane.b32.xlu0 %v121_v27, %s1123_s1  ;;  %v902_v27 = vunpack.c.h.bf16 %v924_v23 }
 0x152   :  { %v118_v29 = vpop.permute.xlu0 %117 }
 0x153   :  { %v122_v30 = vmul.f32 %v118_v29, %v100_v28 }
 0x155   :  { %127 = vrot.lane.b32.xlu1 %v122_v30, %s1123_s1 }
 0x1c3   :  { %v126_v34 = vpop.permute.xlu0 %125 }
 0x1c4   :  { %v131_v35 = vadd.f32 %v126_v34, %v111_v32 }
 0x1c6   :  { %1033 = vtanh.f32 %v131_v35 }
 0x1c7   :  { %v128_v37 = vpop.permute.xlu1 %127 }
 0x1c8   :  { %v132_v38 = vadd.f32 %v128_v37, %v112_v36 }
 0x1ca   :  { %1035 = vtanh.f32 %v132_v38 }
 0x1d3   :  { %v1034_v39 = vpop.eup %1033 }
 0x1d4   :  { %137 = vrot.lane.b32.xlu0 %v1034_v39, %s1124_s15 }
 0x1d7   :  { %v1036_v40 = vpop.eup %1035 }
 0x1d8   :  { %139 = vrot.lane.b32.xlu1 %v1036_v40, %s1124_s15 }
 0x246   :  { %v138_v41 = vpop.permute.xlu0 %137 }
 0x247   :  { %v143_v43 = vmul.f32 %v138_v41, %v99_v24  ;;  %v901_v24 = vunpack.c.l.bf16 %v924_v23 }
 0x24a   :  { %v140_v42 = vpop.permute.xlu1 %139 }
 0x24b   :  { %v144_v44 = vmul.f32 %v140_v42, %v100_v28 }
 0x24d   :  { %v150_v45 = vpack.c.bf16 %v144_v44, %v143_v43 }
 0x24f   :  { %152 = vrot.lane.b32.xlu0 %v150_v45, %s1123_s1 }
 0x2c1   :  { %v153_v46 = vpop.permute.xlu0 %152 }
 0x2c2   :  { %967 = vmatmul.mubr.msk.bf16.vlgmr.msra.gmra.mxu1 %vm16_vm0, %v153_v46 }
 0x2c3   :  { %979 = vmatpush3.bf16.msra.mxu1 %v1145_v1  ;;  %982 = vmatprep.mubr.msk.bf16.mxu1 %vm1122_vm1, %v1121_v0 }
 0x2c4   :  { %980 = vmatprep.subr.bf16.mxu1 %v1121_v0 }
 0x2c7   :  { %981 = vmatpush3.bf16.msra.mxu1 %v1164_v2 }
 0x2c8   :  { %994 = vmatprep.subr.bf16.mxu1 %v1121_v0 }
 0x382   :  { %v191_v49 = vpop.f32.mrf.mxu1 }
 0x383   :  { %v198_v50 = vadd.f32 %v897_v48, %v191_v49 }
 0x384   :  { %v968_v52 = vpop.f32.mrf.mxu1 }
 0x385   :  { %1037 = vtanh.f32 %v198_v50  ;;  %v200_v58 = vmul.f32 0.5, %v198_v50 }
 0x386   :  { %v194_v53 = vpop.f32.mrf.mxu1 }
 0x387   :  { %v199_v54 = vadd.f32 %v898_v51, %v194_v53 }
 0x388   :  { %v969_v55 = vpop.f32.mrf.mxu1 }
 0x389   :  { %1039 = vtanh.f32 %v199_v54  ;;  %v201_v59 = vmul.f32 0.5, %v199_v54 }
 0x38a   :  { %1041 = vtanh.f32 %v200_v58 }
 0x38b   :  { %1043 = vtanh.f32 %v201_v59 }
 0x392   :  { %v1038_v56 = vpop.eup %1037 }
 0x393   :  { %214 = vrot.lane.b32.xlu1 %v1038_v56, %s1124_s15 }
 0x396   :  { %v1040_v57 = vpop.eup %1039 }
 0x397   :  { %216 = vrot.lane.b32.xlu0 %v1040_v57, %s1124_s15  ;;  %v1042_v60 = vpop.eup %1041 }
 0x398   :  { %v204_v61 = vmul.f32 0.5, %v1042_v60  ;;  %v1044_v62 = vpop.eup %1043  ;;  %v925_v60 = vld [vmem:[%s1311_s0 + $0x18] sm:$0xff]  }
 0x399   :  { %v205_v3 = vmul.f32 0.5, %v1044_v62 }
 0x39a   :  { %v206_v63 = vadd.f32 0.5, %v204_v61  ;;  %v905_v61 = vunpack.c.l.bf16 %v925_v60 }
 0x39b   :  { %v207_v6 = vadd.f32 0.5, %v205_v3  ;;  %v906_v3 = vunpack.c.h.bf16 %v925_v60 }
 0x39c   :  { %v210_v9 = vmul.f32 %v206_v63, %v131_v35 }
 0x39d   :  { %v211_v12 = vmul.f32 %v207_v6, %v132_v38 }
 0x405   :  { %v215_v4 = vpop.permute.xlu1 %214 }
 0x406   :  { %v220_v5 = vmul.f32 %v215_v4, %v206_v63 }
 0x408   :  { %224 = vrot.lane.b32.xlu1 %v220_v5, %s1123_s1 }
 0x409   :  { %v217_v7 = vpop.permute.xlu0 %216 }
 0x40a   :  { %v221_v8 = vmul.f32 %v217_v7, %v207_v6 }
 0x40c   :  { %226 = vrot.lane.b32.xlu0 %v221_v8, %s1123_s1 }
 0x47a   :  { %v225_v10 = vpop.permute.xlu1 %224 }
 0x47b   :  { %v230_v11 = vadd.f32 %v225_v10, %v210_v9 }
 0x47d   :  { %1045 = vtanh.f32 %v230_v11 }
 0x47e   :  { %v227_v13 = vpop.permute.xlu0 %226 }
 0x47f   :  { %v231_v14 = vadd.f32 %v227_v13, %v211_v12 }
 0x481   :  { %1047 = vtanh.f32 %v231_v14 }
 0x48a   :  { %v1046_v15 = vpop.eup %1045 }
 0x48b   :  { %236 = vrot.lane.b32.xlu1 %v1046_v15, %s1124_s15 }
 0x48e   :  { %v1048_v16 = vpop.eup %1047 }
 0x48f   :  { %238 = vrot.lane.b32.xlu0 %v1048_v16, %s1124_s15 }
 0x4fd   :  { %v237_v17 = vpop.permute.xlu1 %236 }
 0x4fe   :  { %v242_v19 = vmul.f32 %v237_v17, %v206_v63 }
 0x501   :  { %v239_v18 = vpop.permute.xlu0 %238 }
 0x502   :  { %v243_v20 = vmul.f32 %v239_v18, %v207_v6 }
 0x504   :  { %v249_v21 = vpack.c.bf16 %v243_v20, %v242_v19 }
 0x506   :  { %251 = vrot.lane.b32.xlu1 %v249_v21, %s1123_s1 }
 0x578   :  { %v252_v22 = vpop.permute.xlu1 %251 }
 0x579   :  { %975 = vmatmul.mubr.msk.bf16.vlgmr.msra.gmra.mxu0 %vm16_vm0, %v252_v22 }
 0x57a   :  { %987 = vmatpush3.bf16.msra.mxu0 %v1145_v1  ;;  %990 = vmatprep.mubr.msk.bf16.mxu0 %vm1122_vm1, %v1121_v0 }
 0x57b   :  { %988 = vmatprep.subr.bf16.mxu0 %v1121_v0 }
 0x57e   :  { %989 = vmatpush3.bf16.msra.mxu0 %v1164_v2 }
 0x57f   :  { %1002 = vmatprep.subr.bf16.mxu0 %v1121_v0 }
 0x639   :  { %v290_v25 = vpop.f32.mrf.mxu0 }
 0x63a   :  { %v297_v26 = vadd.f32 %v901_v24, %v290_v25 }
 0x63b   :  { %v976_v28 = vpop.f32.mrf.mxu0 }
 0x63c   :  { %1049 = vtanh.f32 %v297_v26  ;;  %v299_v34 = vmul.f32 0.5, %v297_v26 }
 0x63d   :  { %v293_v29 = vpop.f32.mrf.mxu0 }
 0x63e   :  { %v298_v30 = vadd.f32 %v902_v27, %v293_v29 }
 0x63f   :  { %v977_v31 = vpop.f32.mrf.mxu0 }
 0x640   :  { %1051 = vtanh.f32 %v298_v30  ;;  %v300_v35 = vmul.f32 0.5, %v298_v30 }
 0x641   :  { %1053 = vtanh.f32 %v299_v34 }
 0x642   :  { %1055 = vtanh.f32 %v300_v35 }
 0x649   :  { %v1050_v32 = vpop.eup %1049 }
 0x64a   :  { %313 = vrot.lane.b32.xlu0 %v1050_v32, %s1124_s15 }
 0x64d   :  { %v1052_v33 = vpop.eup %1051 }
 0x64e   :  { %315 = vrot.lane.b32.xlu1 %v1052_v33, %s1124_s15  ;;  %v1054_v36 = vpop.eup %1053 }
 0x64f   :  { %v303_v37 = vmul.f32 0.5, %v1054_v36  ;;  %v1056_v38 = vpop.eup %1055  ;;  %v926_v36 = vld [vmem:[%s1311_s0 + $0x20] sm:$0xff]  }
 0x650   :  { %v304_v40 = vmul.f32 0.5, %v1056_v38 }
 0x651   :  { %v305_v39 = vadd.f32 0.5, %v303_v37  ;;  %v909_v37 = vunpack.c.l.bf16 %v926_v36 }
 0x652   :  { %v306_v43 = vadd.f32 0.5, %v304_v40  ;;  %v910_v40 = vunpack.c.h.bf16 %v926_v36 }
 0x653   :  { %v309_v46 = vmul.f32 %v305_v39, %v230_v11 }
 0x654   :  { %v310_v49 = vmul.f32 %v306_v43, %v231_v14 }
 0x6bc   :  { %v314_v41 = vpop.permute.xlu0 %313 }
 0x6bd   :  { %v319_v42 = vmul.f32 %v314_v41, %v305_v39 }
 0x6bf   :  { %323 = vrot.lane.b32.xlu0 %v319_v42, %s1123_s1 }
 0x6c0   :  { %v316_v44 = vpop.permute.xlu1 %315 }
 0x6c1   :  { %v320_v45 = vmul.f32 %v316_v44, %v306_v43 }
 0x6c3   :  { %325 = vrot.lane.b32.xlu1 %v320_v45, %s1123_s1 }
 0x731   :  { %v324_v47 = vpop.permute.xlu0 %323 }
 0x732   :  { %v329_v48 = vadd.f32 %v324_v47, %v309_v46 }
 0x734   :  { %1057 = vtanh.f32 %v329_v48 }
 0x735   :  { %v326_v50 = vpop.permute.xlu1 %325 }
 0x736   :  { %v330_v51 = vadd.f32 %v326_v50, %v310_v49 }
 0x738   :  { %1059 = vtanh.f32 %v330_v51 }
 0x741   :  { %v1058_v52 = vpop.eup %1057 }
 0x742   :  { %335 = vrot.lane.b32.xlu0 %v1058_v52, %s1124_s15 }
 0x745   :  { %v1060_v53 = vpop.eup %1059 }
 0x746   :  { %337 = vrot.lane.b32.xlu1 %v1060_v53, %s1124_s15 }
 0x7b4   :  { %v336_v54 = vpop.permute.xlu0 %335 }
 0x7b5   :  { %v341_v56 = vmul.f32 %v336_v54, %v305_v39 }
 0x7b8   :  { %v338_v55 = vpop.permute.xlu1 %337 }
 0x7b9   :  { %v342_v57 = vmul.f32 %v338_v55, %v306_v43 }
 0x7bb   :  { %v348_v58 = vpack.c.bf16 %v342_v57, %v341_v56 }
 0x7bd   :  { %350 = vrot.lane.b32.xlu0 %v348_v58, %s1123_s1 }
 0x82f   :  { %v351_v59 = vpop.permute.xlu0 %350 }
 0x830   :  { %983 = vmatmul.mubr.msk.bf16.vlgmr.msra.gmra.mxu1 %vm16_vm0, %v351_v59 }
 0x831   :  { %995 = vmatpush3.bf16.msra.mxu1 %v1145_v1  ;;  %998 = vmatprep.mubr.msk.bf16.mxu1 %vm1122_vm1, %v1121_v0 }
 0x832   :  { %996 = vmatprep.subr.bf16.mxu1 %v1121_v0 }
 0x835   :  { %997 = vmatpush3.bf16.msra.mxu1 %v1164_v2 }
 0x836   :  { %1010 = vmatprep.subr.bf16.mxu1 %v1121_v0 }
 0x8f0   :  { %v389_v62 = vpop.f32.mrf.mxu1 }
 0x8f1   :  { %v396_v63 = vadd.f32 %v905_v61, %v389_v62 }
 0x8f2   :  { %v984_v4 = vpop.f32.mrf.mxu1 }
 0x8f3   :  { %1061 = vtanh.f32 %v396_v63  ;;  %v398_v10 = vmul.f32 0.5, %v396_v63 }
 0x8f4   :  { %v392_v5 = vpop.f32.mrf.mxu1 }
 0x8f5   :  { %v397_v6 = vadd.f32 %v906_v3, %v392_v5 }
 0x8f6   :  { %v985_v7 = vpop.f32.mrf.mxu1 }
 0x8f7   :  { %1063 = vtanh.f32 %v397_v6  ;;  %v399_v11 = vmul.f32 0.5, %v397_v6 }
 0x8f8   :  { %1065 = vtanh.f32 %v398_v10 }
 0x8f9   :  { %1067 = vtanh.f32 %v399_v11 }
 0x900   :  { %v1062_v8 = vpop.eup %1061 }
 0x901   :  { %412 = vrot.lane.b32.xlu1 %v1062_v8, %s1124_s15 }
 0x904   :  { %v1064_v9 = vpop.eup %1063 }
 0x905   :  { %414 = vrot.lane.b32.xlu0 %v1064_v9, %s1124_s15  ;;  %v1066_v12 = vpop.eup %1065 }
 0x906   :  { %v402_v13 = vmul.f32 0.5, %v1066_v12  ;;  %v1068_v14 = vpop.eup %1067  ;;  %v927_v12 = vld [vmem:[%s1311_s0 + $0x28] sm:$0xff]  }
 0x907   :  { %v403_v16 = vmul.f32 0.5, %v1068_v14 }
 0x908   :  { %v404_v15 = vadd.f32 0.5, %v402_v13  ;;  %v913_v13 = vunpack.c.l.bf16 %v927_v12 }
 0x909   :  { %v405_v19 = vadd.f32 0.5, %v403_v16  ;;  %v914_v16 = vunpack.c.h.bf16 %v927_v12 }
 0x90a   :  { %v408_v22 = vmul.f32 %v404_v15, %v329_v48 }
 0x90b   :  { %v409_v25 = vmul.f32 %v405_v19, %v330_v51 }
 0x973   :  { %v413_v17 = vpop.permute.xlu1 %412 }
 0x974   :  { %v418_v18 = vmul.f32 %v413_v17, %v404_v15 }
 0x976   :  { %422 = vrot.lane.b32.xlu1 %v418_v18, %s1123_s1 }
 0x977   :  { %v415_v20 = vpop.permute.xlu0 %414 }
 0x978   :  { %v419_v21 = vmul.f32 %v415_v20, %v405_v19 }
 0x97a   :  { %424 = vrot.lane.b32.xlu0 %v419_v21, %s1123_s1 }
 0x9e8   :  { %v423_v23 = vpop.permute.xlu1 %422 }
 0x9e9   :  { %v428_v24 = vadd.f32 %v423_v23, %v408_v22 }
 0x9eb   :  { %1069 = vtanh.f32 %v428_v24 }
 0x9ec   :  { %v425_v26 = vpop.permute.xlu0 %424 }
 0x9ed   :  { %v429_v27 = vadd.f32 %v425_v26, %v409_v25 }
 0x9ef   :  { %1071 = vtanh.f32 %v429_v27 }
 0x9f8   :  { %v1070_v28 = vpop.eup %1069 }
 0x9f9   :  { %434 = vrot.lane.b32.xlu1 %v1070_v28, %s1124_s15 }
 0x9fc   :  { %v1072_v29 = vpop.eup %1071 }
 0x9fd   :  { %436 = vrot.lane.b32.xlu0 %v1072_v29, %s1124_s15 }
 0xa6b   :  { %v435_v30 = vpop.permute.xlu1 %434 }
 0xa6c   :  { %v440_v32 = vmul.f32 %v435_v30, %v404_v15 }
 0xa6f   :  { %v437_v31 = vpop.permute.xlu0 %436 }
 0xa70   :  { %v441_v33 = vmul.f32 %v437_v31, %v405_v19 }
 0xa72   :  { %v447_v34 = vpack.c.bf16 %v441_v33, %v440_v32 }
 0xa74   :  { %449 = vrot.lane.b32.xlu1 %v447_v34, %s1123_s1 }
 0xae6   :  { %v450_v35 = vpop.permute.xlu1 %449 }
 0xae7   :  { %991 = vmatmul.mubr.msk.bf16.vlgmr.msra.gmra.mxu0 %vm16_vm0, %v450_v35 }
 0xae8   :  { %1003 = vmatpush3.bf16.msra.mxu0 %v1145_v1  ;;  %1006 = vmatprep.mubr.msk.bf16.mxu0 %vm1122_vm1, %v1121_v0 }
 0xae9   :  { %1004 = vmatprep.subr.bf16.mxu0 %v1121_v0 }
 0xaec   :  { %1005 = vmatpush3.bf16.msra.mxu0 %v1164_v2 }
 0xba7   :  { %v488_v38 = vpop.f32.mrf.mxu0 }
 0xba8   :  { %v495_v39 = vadd.f32 %v909_v37, %v488_v38 }
 0xba9   :  { %v992_v41 = vpop.f32.mrf.mxu0 }
 0xbaa   :  { %1073 = vtanh.f32 %v495_v39  ;;  %v497_v47 = vmul.f32 0.5, %v495_v39 }
 0xbab   :  { %v491_v42 = vpop.f32.mrf.mxu0 }
 0xbac   :  { %v496_v43 = vadd.f32 %v910_v40, %v491_v42 }
 0xbad   :  { %v993_v44 = vpop.f32.mrf.mxu0 }
 0xbae   :  { %1075 = vtanh.f32 %v496_v43  ;;  %v498_v48 = vmul.f32 0.5, %v496_v43 }
 0xbaf   :  { %1077 = vtanh.f32 %v497_v47 }
 0xbb0   :  { %1079 = vtanh.f32 %v498_v48 }
 0xbb7   :  { %v1074_v45 = vpop.eup %1073 }
 0xbb8   :  { %511 = vrot.lane.b32.xlu0 %v1074_v45, %s1124_s15 }
 0xbbb   :  { %v1076_v46 = vpop.eup %1075 }
 0xbbc   :  { %513 = vrot.lane.b32.xlu1 %v1076_v46, %s1124_s15  ;;  %v1078_v49 = vpop.eup %1077  ;;  %v928_v46 = vld [vmem:[%s1311_s0 + $0x30] sm:$0xff]  }
 0xbbd   :  { %v501_v50 = vmul.f32 0.5, %v1078_v49  ;;  %v1080_v51 = vpop.eup %1079  ;;  %v917_v47 = vunpack.c.l.bf16 %v928_v46 }
 0xbbe   :  { %v502_v53 = vmul.f32 0.5, %v1080_v51 }
 0xbbf   :  { %v503_v52 = vadd.f32 0.5, %v501_v50  ;;  %v918_v50 = vunpack.c.h.bf16 %v928_v46 }
 0xbc0   :  { %v504_v56 = vadd.f32 0.5, %v502_v53 }
 0xbc1   :  { %v507_v59 = vmul.f32 %v503_v52, %v428_v24 }
 0xbc2   :  { %v508_v62 = vmul.f32 %v504_v56, %v429_v27 }
 0xc2a   :  { %v512_v54 = vpop.permute.xlu0 %511 }
 0xc2b   :  { %v517_v55 = vmul.f32 %v512_v54, %v503_v52 }
 0xc2d   :  { %521 = vrot.lane.b32.xlu0 %v517_v55, %s1123_s1 }
 0xc2e   :  { %v514_v57 = vpop.permute.xlu1 %513 }
 0xc2f   :  { %v518_v58 = vmul.f32 %v514_v57, %v504_v56 }
 0xc31   :  { %523 = vrot.lane.b32.xlu1 %v518_v58, %s1123_s1 }
 0xc9f   :  { %v522_v60 = vpop.permute.xlu0 %521 }
 0xca0   :  { %v527_v61 = vadd.f32 %v522_v60, %v507_v59 }
 0xca2   :  { %1081 = vtanh.f32 %v527_v61 }
 0xca3   :  { %v524_v63 = vpop.permute.xlu1 %523 }
 0xca4   :  { %v528_v3 = vadd.f32 %v524_v63, %v508_v62 }
 0xca6   :  { %1083 = vtanh.f32 %v528_v3 }
 0xcaf   :  { %v1082_v4 = vpop.eup %1081 }
 0xcb0   :  { %533 = vrot.lane.b32.xlu0 %v1082_v4, %s1124_s15 }
 0xcb3   :  { %v1084_v5 = vpop.eup %1083 }
 0xcb4   :  { %535 = vrot.lane.b32.xlu1 %v1084_v5, %s1124_s15 }
 0xd22   :  { %v534_v6 = vpop.permute.xlu0 %533 }
 0xd23   :  { %v539_v8 = vmul.f32 %v534_v6, %v503_v52 }
 0xd26   :  { %v536_v7 = vpop.permute.xlu1 %535 }
 0xd27   :  { %v540_v9 = vmul.f32 %v536_v7, %v504_v56 }
 0xd29   :  { %v546_v10 = vpack.c.bf16 %v540_v9, %v539_v8 }
 0xd2b   :  { %548 = vrot.lane.b32.xlu0 %v546_v10, %s1123_s1 }
 0xd9d   :  { %v549_v11 = vpop.permute.xlu0 %548 }
 0xd9e   :  { %999 = vmatmul.mubr.msk.bf16.vlgmr.msra.gmra.mxu1 %vm16_vm0, %v549_v11 }
 0xd9f   :  { %1011 = vmatpush3.bf16.msra.mxu1 %v1145_v1  ;;  %1014 = vmatprep.mubr.msk.bf16.mxu1 %vm1122_vm1, %v1121_v0 }
 0xda0   :  { %1012 = vmatprep.subr.bf16.mxu1 %v1121_v0 }
 0xda3   :  { %1013 = vmatpush3.bf16.msra.mxu1 %v1164_v2 }
 0xe5e   :  { %v587_v14 = vpop.f32.mrf.mxu1 }
 0xe5f   :  { %v594_v15 = vadd.f32 %v913_v13, %v587_v14 }
 0xe60   :  { %v1000_v17 = vpop.f32.mrf.mxu1 }
 0xe61   :  { %1085 = vtanh.f32 %v594_v15  ;;  %v596_v2 = vmul.f32 0.5, %v594_v15 }
 0xe62   :  { %v590_v18 = vpop.f32.mrf.mxu1 }
 0xe63   :  { %v595_v19 = vadd.f32 %v914_v16, %v590_v18 }
 0xe64   :  { %v1001_v1 = vpop.f32.mrf.mxu1 }
 0xe65   :  { %1087 = vtanh.f32 %v595_v19  ;;  %v597_v21 = vmul.f32 0.5, %v595_v19 }
 0xe66   :  { %1089 = vtanh.f32 %v596_v2 }
 0xe67   :  { %1091 = vtanh.f32 %v597_v21 }
 0xe6e   :  { %v1086_v20 = vpop.eup %1085 }
 0xe6f   :  { %610 = vrot.lane.b32.xlu1 %v1086_v20, %s1124_s15 }
 0xe72   :  { %v1088_v0 = vpop.eup %1087 }
 0xe73   :  { %612 = vrot.lane.b32.xlu0 %v1088_v0, %s1124_s15  ;;  %v1090_v22 = vpop.eup %1089  ;;  %v929_v0 = vld [vmem:[%s1311_s0 + $0x38] sm:$0xff]   ;;  %s1125_s0 = smov 96  }
 0xe74   :  { %v600_v23 = vmul.f32 0.5, %v1090_v22  ;;  %v1092_v24 = vpop.eup %1091  ;;  %v921_v2 = vunpack.c.l.bf16 %v929_v0 }
 0xe75   :  { %v601_v26 = vmul.f32 0.5, %v1092_v24 }
 0xe76   :  { %v602_v25 = vadd.f32 0.5, %v600_v23  ;;  %v922_v23 = vunpack.c.h.bf16 %v929_v0 }
 0xe77   :  { %v603_v29 = vadd.f32 0.5, %v601_v26 }
 0xe78   :  { %v606_v32 = vmul.f32 %v602_v25, %v527_v61 }
 0xe79   :  { %v607_v35 = vmul.f32 %v603_v29, %v528_v3 }
 0xee1   :  { %v611_v27 = vpop.permute.xlu1 %610 }
 0xee2   :  { %v616_v28 = vmul.f32 %v611_v27, %v602_v25 }
 0xee4   :  { %620 = vrot.lane.b32.xlu1 %v616_v28, %s1123_s1 }
 0xee5   :  { %v613_v30 = vpop.permute.xlu0 %612 }
 0xee6   :  { %v617_v31 = vmul.f32 %v613_v30, %v603_v29 }
 0xee8   :  { %622 = vrot.lane.b32.xlu0 %v617_v31, %s1123_s1 }
 0xf56   :  { %v621_v33 = vpop.permute.xlu1 %620 }
 0xf57   :  { %v626_v34 = vadd.f32 %v621_v33, %v606_v32 }
 0xf59   :  { %1093 = vtanh.f32 %v626_v34 }
 0xf5a   :  { %v623_v36 = vpop.permute.xlu0 %622 }
 0xf5b   :  { %v627_v37 = vadd.f32 %v623_v36, %v607_v35 }
 0xf5d   :  { %1095 = vtanh.f32 %v627_v37 }
 0xf66   :  { %v1094_v38 = vpop.eup %1093 }
 0xf67   :  { %632 = vrot.lane.b32.xlu1 %v1094_v38, %s1124_s15 }
 0xf6a   :  { %v1096_v39 = vpop.eup %1095 }
 0xf6b   :  { %634 = vrot.lane.b32.xlu0 %v1096_v39, %s1124_s15 }
 0xfd9   :  { %v633_v40 = vpop.permute.xlu1 %632 }
 0xfda   :  { %v638_v42 = vmul.f32 %v633_v40, %v602_v25 }
 0xfdd   :  { %v635_v41 = vpop.permute.xlu0 %634 }
 0xfde   :  { %v639_v43 = vmul.f32 %v635_v41, %v603_v29 }
 0xfe0   :  { %v645_v44 = vpack.c.bf16 %v639_v43, %v638_v42 }
 0xfe2   :  { %647 = vrot.lane.b32.xlu1 %v645_v44, %s1123_s1 }
0x1054   :  { %v648_v45 = vpop.permute.xlu1 %647 }
0x1055   :  { %1007 = vmatmul.mubr.msk.bf16.vlgmr.msra.gmra.mxu0 %vm16_vm0, %v648_v45 }
0x1115   :  { %v686_v48 = vpop.f32.mrf.mxu0 }
0x1116   :  { %v693_v49 = vadd.f32 %v917_v47, %v686_v48 }
0x1117   :  { %v1008_v51 = vpop.f32.mrf.mxu0 }
0x1118   :  { %1097 = vtanh.f32 %v693_v49  ;;  %v695_v57 = vmul.f32 0.5, %v693_v49 }
0x1119   :  { %v689_v52 = vpop.f32.mrf.mxu0 }
0x111a   :  { %v694_v53 = vadd.f32 %v918_v50, %v689_v52 }
0x111b   :  { %v1009_v54 = vpop.f32.mrf.mxu0 }
0x111c   :  { %1099 = vtanh.f32 %v694_v53  ;;  %v696_v58 = vmul.f32 0.5, %v694_v53 }
0x111d   :  { %1101 = vtanh.f32 %v695_v57 }
0x111e   :  { %1103 = vtanh.f32 %v696_v58 }
0x1125   :  { %v1098_v55 = vpop.eup %1097 }
0x1126   :  { %709 = vrot.lane.b32.xlu0 %v1098_v55, %s1124_s15 }
0x1129   :  { %v1100_v56 = vpop.eup %1099 }
0x112a   :  { %711 = vrot.lane.b32.xlu1 %v1100_v56, %s1124_s15  ;;  %v1102_v59 = vpop.eup %1101 }
0x112b   :  { %v699_v60 = vmul.f32 0.5, %v1102_v59  ;;  %v1104_v61 = vpop.eup %1103 }
0x112c   :  { %v700_v63 = vmul.f32 0.5, %v1104_v61 }
0x112d   :  { %v701_v62 = vadd.f32 0.5, %v699_v60 }
0x112e   :  { %v702_v5 = vadd.f32 0.5, %v700_v63 }
0x112f   :  { %v705_v8 = vmul.f32 %v701_v62, %v626_v34 }
0x1130   :  { %v706_v11 = vmul.f32 %v702_v5, %v627_v37 }
0x1198   :  { %v710_v3 = vpop.permute.xlu0 %709 }
0x1199   :  { %v715_v4 = vmul.f32 %v710_v3, %v701_v62 }
0x119b   :  { %719 = vrot.lane.b32.xlu0 %v715_v4, %s1123_s1 }
0x119c   :  { %v712_v6 = vpop.permute.xlu1 %711 }
0x119d   :  { %v716_v7 = vmul.f32 %v712_v6, %v702_v5 }
0x119f   :  { %721 = vrot.lane.b32.xlu1 %v716_v7, %s1123_s1 }
0x120d   :  { %v720_v9 = vpop.permute.xlu0 %719 }
0x120e   :  { %v725_v10 = vadd.f32 %v720_v9, %v705_v8 }
0x1210   :  { %1105 = vtanh.f32 %v725_v10 }
0x1211   :  { %v722_v12 = vpop.permute.xlu1 %721 }
0x1212   :  { %v726_v13 = vadd.f32 %v722_v12, %v706_v11 }
0x1214   :  { %1107 = vtanh.f32 %v726_v13 }
0x121d   :  { %v1106_v14 = vpop.eup %1105 }
0x121e   :  { %731 = vrot.lane.b32.xlu0 %v1106_v14, %s1124_s15 }
0x1221   :  { %v1108_v15 = vpop.eup %1107 }
0x1222   :  { %733 = vrot.lane.b32.xlu1 %v1108_v15, %s1124_s15 }
0x1290   :  { %v732_v16 = vpop.permute.xlu0 %731 }
0x1291   :  { %v737_v18 = vmul.f32 %v732_v16, %v701_v62 }
0x1294   :  { %v734_v17 = vpop.permute.xlu1 %733 }
0x1295   :  { %v738_v19 = vmul.f32 %v734_v17, %v702_v5 }
0x1297   :  { %v744_v1 = vpack.c.bf16 %v738_v19, %v737_v18 }
0x1299   :  { %746 = vrot.lane.b32.xlu0 %v744_v1, %s1123_s1 }
0x130b   :  { %v747_v20 = vpop.permute.xlu0 %746 }
0x130c   :  { %1015 = vmatmul.mubr.msk.bf16.vlgmr.msra.gmra.mxu1 %vm16_vm0, %v747_v20 }
0x13cc   :  { %v785_v21 = vpop.f32.mrf.mxu1 }
0x13cd   :  { %v792_v22 = vadd.f32 %v921_v2, %v785_v21 }
0x13ce   :  { %v1016_v24 = vpop.f32.mrf.mxu1 }
0x13cf   :  { %1109 = vtanh.f32 %v792_v22  ;;  %v794_v30 = vmul.f32 0.5, %v792_v22 }
0x13d0   :  { %v788_v25 = vpop.f32.mrf.mxu1 }
0x13d1   :  { %v793_v26 = vadd.f32 %v922_v23, %v788_v25 }
0x13d2   :  { %v1017_v27 = vpop.f32.mrf.mxu1 }
0x13d3   :  { %1111 = vtanh.f32 %v793_v26  ;;  %v795_v31 = vmul.f32 0.5, %v793_v26 }
0x13d4   :  { %1113 = vtanh.f32 %v794_v30 }
0x13d5   :  { %1115 = vtanh.f32 %v795_v31 }
0x13dc   :  { %v1110_v28 = vpop.eup %1109 }
0x13dd   :  { %808 = vrot.lane.b32.xlu1 %v1110_v28, %s1124_s15 }
0x13e0   :  { %v1112_v29 = vpop.eup %1111 }
0x13e1   :  { %810 = vrot.lane.b32.xlu0 %v1112_v29, %s1124_s15  ;;  %v1114_v32 = vpop.eup %1113 }
0x13e2   :  { %v798_v33 = vmul.f32 0.5, %v1114_v32  ;;  %v1116_v34 = vpop.eup %1115 }
0x13e3   :  { %v799_v36 = vmul.f32 0.5, %v1116_v34 }
0x13e4   :  { %v800_v35 = vadd.f32 0.5, %v798_v33 }
0x13e5   :  { %v801_v39 = vadd.f32 0.5, %v799_v36 }
0x13e6   :  { %v804_v42 = vmul.f32 %v800_v35, %v725_v10 }
0x13e7   :  { %v805_v45 = vmul.f32 %v801_v39, %v726_v13 }
0x144f   :  { %v809_v37 = vpop.permute.xlu1 %808 }
0x1450   :  { %v814_v38 = vmul.f32 %v809_v37, %v800_v35 }
0x1452   :  { %818 = vrot.lane.b32.xlu1 %v814_v38, %s1123_s1 }
0x1453   :  { %v811_v40 = vpop.permute.xlu0 %810 }
0x1454   :  { %v815_v41 = vmul.f32 %v811_v40, %v801_v39 }
0x1456   :  { %820 = vrot.lane.b32.xlu0 %v815_v41, %s1123_s1 }
0x14c4   :  { %v819_v43 = vpop.permute.xlu1 %818 }
0x14c5   :  { %v824_v44 = vadd.f32 %v819_v43, %v804_v42 }
0x14c7   :  { %1117 = vtanh.f32 %v824_v44 }
0x14c8   :  { %v821_v46 = vpop.permute.xlu0 %820 }
0x14c9   :  { %v825_v47 = vadd.f32 %v821_v46, %v805_v45 }
0x14cb   :  { %1119 = vtanh.f32 %v825_v47 }
0x14d4   :  { %v1118_v48 = vpop.eup %1117 }
0x14d5   :  { %830 = vrot.lane.b32.xlu1 %v1118_v48, %s1124_s15 }
0x14d8   :  { %v1120_v49 = vpop.eup %1119 }
0x14d9   :  { %832 = vrot.lane.b32.xlu0 %v1120_v49, %s1124_s15 }
0x1547   :  { %v831_v50 = vpop.permute.xlu1 %830 }
0x1548   :  { %v836_v51 = vmul.f32 %v831_v50, %v800_v35 }
0x154a   :  { %840 = vrot.lane.b32.xlu1 %v836_v51, %s1123_s1 }
0x154b   :  { %v833_v52 = vpop.permute.xlu0 %832 }
0x154c   :  { %v837_v53 = vmul.f32 %v833_v52, %v801_v39 }
0x154e   :  { %850 = vrot.lane.b32.xlu1 %v824_v44, %s1125_s0  ;;  %842 = vrot.lane.b32.xlu0 %v837_v53, %s1123_s1 }
0x1552   :  { %852 = vrot.lane.b32.xlu0 %v825_v47, %s1125_s0 }
0x15bc   :  { %v841_v54 = vpop.permute.xlu1 %840 }
0x15bd   :  { %846 = vst.msk [vmem:[#allocation2] sm:$0xff] %vm16_vm0, %v841_v54  ;;  %861 = vst.msk [vmem:[%s1312_s2] sm:$0xff] %vm16_vm0, %v841_v54 }
0x15c0   :  { %v851_v55 = vpop.permute.xlu1 %850  ;;  %v843_v56 = vpop.permute.xlu0 %842 }
0x15c1   :  { %856 = vst.msk [vmem:[#allocation3] sm:$0xff] %vm16_vm0, %v851_v55  ;;  %847 = vst.msk [vmem:[#allocation2 + $0x8] sm:$0xff] %vm16_vm0, %v843_v56 }
0x15c2   :  { %862 = vst.msk [vmem:[%s1312_s2 + $0x8] sm:$0xff] %vm16_vm0, %v843_v56 }
0x15c4   :  { %v853_v57 = vpop.permute.xlu0 %852 }
0x15c5   :  { %857 = vst.msk [vmem:[#allocation3 + $0x8] sm:$0xff] %vm16_vm0, %v853_v57 }

</bundles_post_ra>
